<compile_context>
chip_gen: v5e
topology: v5e:2x2
jax: 0.10.0
libtpu: 0.0.40
codegen_flags: <defaults>
</compile_context>

<pallas_src>
import jax
import jax.numpy as jnp
from jax.experimental import pallas as pl
from jax.experimental.pallas import tpu as pltpu

LANE = 128     # lane width; all padded batch sizes are multiples of this
TB = 4096      # batch columns (lanes) per grid step


def _mlp_kernel(x_ref, p_ref, b2_ref, o_ref):
    # x_ref : (2, tb)  f32  — inputs, batch on the lane axis
    # p_ref : (8, 4)   f32  — packed params:
    #                         [:,0]=w1[0,:]  [:,1]=w1[1,:]  [:,2]=b1  [:,3]=w2[:,0]
    # b2_ref: (1,)     f32  — output bias scalar in SMEM
    # o_ref : (1, tb)  f32  — lane-dense output row
    p = p_ref[...]
    w1a = p[:, 0:1]          # (8, 1)  weights from input feature 0
    w1b = p[:, 1:2]          # (8, 1)  weights from input feature 1
    b1c = p[:, 2:3]          # (8, 1)  hidden bias
    w2c = p[:, 3:4]          # (8, 1)  output weights

    x0 = x_ref[0:1, :]       # (1, tb)
    x1 = x_ref[1:2, :]       # (1, tb)

    # Layer 1 on the VPU: two broadcast multiply-adds, hidden on sublanes.
    h = jnp.maximum(w1a * x0 + w1b * x1 + b1c, 0.0)        # (8, tb)

    # Layer 2: VPU multiply + 8-wide sublane reduce (cheap XLU work).
    o = jnp.sum(w2c * h, axis=0, keepdims=True) + b2_ref[0]  # (1, tb)
    o_ref[...] = o.astype(o_ref.dtype)


def prepare_params(w1, b1, w2, b2):
    """One-time packing of the parameters into kernel-ready form."""
    # w1: (2, 8), b1: (8,), w2: (8, 1), b2: (1,)
    p = jnp.stack(
        [w1[0, :], w1[1, :], b1, w2[:, 0]], axis=1
    ).astype(jnp.float32)                                   # (8, 4), resident in VMEM
    b2p = jnp.asarray(b2, jnp.float32).reshape(1)           # scalar in SMEM
    return p, b2p


def _bucket(B):
    """Pad the batch to a small set of sizes to bound recompiles.

    Returns (bpad, tb): bpad is a multiple of 128; for bpad > TB the grid
    (bpad // tb) has an even number of steps >= 2 (v7x two-TC sharding)."""
    if B <= TB:
        bpad = max(LANE, 1 << max(B - 1, 1).bit_length())   # next pow2, >= 128
        bpad = min(bpad, TB)
        return bpad, bpad
    step2 = 2 * TB
    bpad = ((B + step2 - 1) // step2) * step2
    return bpad, TB


@jax.jit
def _forward_cols(xt, p, b2p):
    # xt: (2, bpad) f32, bpad a multiple of 128
    _, bpad = xt.shape
    tb = min(TB, bpad)
    grid = (bpad // tb,)
    return pl.pallas_call(
        _mlp_kernel,
        out_shape=jax.ShapeDtypeStruct((1, bpad), jnp.float32),
        grid=grid,
        in_specs=[
            pl.BlockSpec((2, tb), lambda i: (0, i)),              # x tile (lane-dense)
            pl.BlockSpec((8, 4), lambda i: (0, 0)),               # packed params (resident)
            pl.BlockSpec(memory_space=pltpu.MemorySpace.SMEM),    # b2 scalar
        ],
        out_specs=pl.BlockSpec((1, tb), lambda i: (0, i)),        # lane-dense output row
        compiler_params=pltpu.CompilerParams(
            dimension_semantics=("parallel",)),
    )(xt, p, b2p)


def mlp_forward(x, params):
    """x: (B, 2) f32; params from prepare_params() -> (B, 1) f32."""
    p, b2p = params
    x = x.astype(jnp.float32)
    B = x.shape[0]
    bpad, _ = _bucket(B)
    xt = x.T                                        # (2, B): batch onto lanes
    if bpad != B:
        xt = jnp.pad(xt, ((0, 0), (0, bpad - B)))   # tail-only padding of the view
    out = _forward_cols(xt, p, b2p)                 # (1, bpad)
    return out[0, :B].reshape(B, 1)


def init_params(key):
    """Deterministic init matching PyTorch nn.Linear (U(-1/sqrt(fan_in), +))."""
    k1, k2, k3, k4 = jax.random.split(key, 4)
    bound1 = 1.0 / jnp.sqrt(2.0)   # fan_in = 2
    bound2 = 1.0 / jnp.sqrt(8.0)   # fan_in = 8
    w1 = jax.random.uniform(k1, (2, 8), jnp.float32, -bound1, bound1)
    b1 = jax.random.uniform(k2, (8,), jnp.float32, -bound1, bound1)
    w2 = jax.random.uniform(k3, (8, 1), jnp.float32, -bound2, bound2)
    b2 = jax.random.uniform(k4, (1,), jnp.float32, -bound2, bound2)
    return w1, b1, w2, b2


if __name__ == "__main__":
    key = jax.random.PRNGKey(0)
    w1, b1, w2, b2 = init_params(key)
    params = prepare_params(w1, b1, w2, b2)   # hoisted, one-time packing

    def ref_fn(xi):
        return jnp.maximum(xi @ w1 + b1, 0.0) @ w2 + b2

    # Same data as the PyTorch script: x = [[1,2],[3,4],[5,6],[7,8]]
    x = jnp.array([[1.0, 2.0], [3.0, 4.0], [5.0, 6.0], [7.0, 8.0]],
                  dtype=jnp.float32)
    out = jax.block_until_ready(mlp_forward(x, params))
    assert out.shape == (4, 1)
    assert jnp.allclose(out, ref_fn(x), atol=1e-5), (out, ref_fn(x))

    # Medium batch: exercises lane padding within a single grid step.
    xb = jax.random.normal(jax.random.PRNGKey(1), (600, 2), jnp.float32)
    outb = jax.block_until_ready(mlp_forward(xb, params))
    assert outb.shape == (600, 1)
    assert jnp.allclose(outb, ref_fn(xb), atol=1e-4), "medium batch mismatch"

    # Large batch: exercises the multi-step (even) grid path for megacore.
    xc = jax.random.normal(jax.random.PRNGKey(2), (9000, 2), jnp.float32)
    outc = jax.block_until_ready(mlp_forward(xc, params))
    assert outc.shape == (9000, 1)
    assert jnp.allclose(outc, ref_fn(xc), atol=1e-4), "large batch mismatch"

    print("KERNEL_OK")
</pallas_src>

<mosaic_0001>
module attributes {stable_mosaic.version = 11 : i64} {
  func.func @_mlp_kernel(%arg0: i32, %arg1: memref<2x128xf32, #tpu.memory_space<vmem>>, %arg2: memref<8x4xf32, #tpu.memory_space<vmem>>, %arg3: memref<1xf32, #tpu.memory_space<smem>>, %arg4: memref<1x128xf32, #tpu.memory_space<vmem>>) attributes {dimension_semantics = [#tpu.dimension_semantics<parallel>], iteration_bounds = array<i64: 1>, scalar_prefetch = 0 : i64, scratch_operands = 0 : i64, tpu.core_type = #tpu.core_type<tc>, window_params = [{transform_indices = @transform_0, window_bounds = array<i64: 2, 128>}, {pipeline_mode = #tpu.pipeline_mode<synchronous>, transform_indices = @transform_1, window_bounds = array<i64: 8, 4>}, {transform_indices = @transform_2, window_bounds = array<i64: 1>}, {transform_indices = @transform_3, window_bounds = array<i64: 1, 128>}]} {
    %c0 = arith.constant 0 : index
    %c0_0 = arith.constant 0 : index
    %0 = vector.load %arg2[%c0, %c0_0] : memref<8x4xf32, #tpu.memory_space<vmem>>, vector<8x4xf32>
    %1 = vector.extract_strided_slice %0 {offsets = [0, 0], sizes = [8, 1], strides = [1, 1]} : vector<8x4xf32> to vector<8x1xf32>
    %2 = vector.extract_strided_slice %0 {offsets = [0, 1], sizes = [8, 1], strides = [1, 1]} : vector<8x4xf32> to vector<8x1xf32>
    %3 = vector.extract_strided_slice %0 {offsets = [0, 2], sizes = [8, 1], strides = [1, 1]} : vector<8x4xf32> to vector<8x1xf32>
    %4 = vector.extract_strided_slice %0 {offsets = [0, 3], sizes = [8, 1], strides = [1, 1]} : vector<8x4xf32> to vector<8x1xf32>
    %c0_1 = arith.constant 0 : index
    %c0_2 = arith.constant 0 : index
    %5 = vector.load %arg1[%c0_1, %c0_2] : memref<2x128xf32, #tpu.memory_space<vmem>>, vector<1x128xf32>
    %c1 = arith.constant 1 : index
    %c0_3 = arith.constant 0 : index
    %6 = vector.load %arg1[%c1, %c0_3] : memref<2x128xf32, #tpu.memory_space<vmem>>, vector<1x128xf32>
    %7 = vector.broadcast %1 : vector<8x1xf32> to vector<8x128xf32>
    %8 = vector.broadcast %5 : vector<1x128xf32> to vector<8x128xf32>
    %9 = arith.mulf %7, %8 : vector<8x128xf32>
    %10 = vector.broadcast %2 : vector<8x1xf32> to vector<8x128xf32>
    %11 = vector.broadcast %6 : vector<1x128xf32> to vector<8x128xf32>
    %12 = arith.mulf %10, %11 : vector<8x128xf32>
    %13 = arith.addf %9, %12 : vector<8x128xf32>
    %14 = vector.broadcast %3 : vector<8x1xf32> to vector<8x128xf32>
    %15 = arith.addf %13, %14 : vector<8x128xf32>
    %cst = arith.constant 0.000000e+00 : f32
    %16 = vector.broadcast %cst : f32 to vector<8x128xf32>
    %17 = arith.maximumf %15, %16 : vector<8x128xf32>
    %18 = vector.broadcast %4 : vector<8x1xf32> to vector<8x128xf32>
    %19 = arith.mulf %18, %17 : vector<8x128xf32>
    %cst_4 = arith.constant dense<0.000000e+00> : vector<128xf32>
    %20 = vector.multi_reduction <add>, %19, %cst_4 [0] : vector<8x128xf32> to vector<128xf32>
    %21 = vector.shape_cast %20 : vector<128xf32> to vector<1x128xf32>
    %c0_5 = arith.constant 0 : index
    %22 = memref.load %arg3[%c0_5] : memref<1xf32, #tpu.memory_space<smem>>
    %23 = vector.broadcast %22 : f32 to vector<1x128xf32>
    %24 = arith.addf %21, %23 : vector<1x128xf32>
    %c0_6 = arith.constant 0 : index
    %c0_7 = arith.constant 0 : index
    %25 = vector.load %arg4[%c0_6, %c0_7] : memref<1x128xf32, #tpu.memory_space<vmem>>, vector<1x128xf32>
    tpu.vector_store %arg4[%c0_6, %c0_7], %24 {strides = array<i32>} : memref<1x128xf32, #tpu.memory_space<vmem>>, vector<1x128xf32>,
    return
  }
  func.func @transform_0(%arg0: i32) -> (i32, i32) {
    %c0_i32 = arith.constant 0 : i32
    %c0_i32_0 = arith.constant 0 : i32
    return %c0_i32, %arg0 : i32, i32
  }
  func.func @transform_1(%arg0: i32) -> (i32, i32) {
    %c0_i32 = arith.constant 0 : i32
    %c0_i32_0 = arith.constant 0 : i32
    %c0_i32_1 = arith.constant 0 : i32
    return %c0_i32, %c0_i32_0 : i32, i32
  }
  func.func @transform_2(%arg0: i32) -> i32 {
    %c0_i32 = arith.constant 0 : i32
    %c0_i32_0 = arith.constant 0 : i32
    return %c0_i32 : i32
  }
  func.func @transform_3(%arg0: i32) -> (i32, i32) {
    %c0_i32 = arith.constant 0 : i32
    %c0_i32_0 = arith.constant 0 : i32
    return %c0_i32, %arg0 : i32, i32
  }
}

</mosaic_0001>

<bundles_post_ra>
// kernel: _forward_cols.1
= control target key start
LH: loop header
LB: loop body
LE: loop exit
PB: predicated region body
PF: predicated region fallthrough
CT: control target
= control target key end

     0   :  { %v108_v1 = vmov 0   ;;  %v109_v2 = vmov 2   ;;  %s148_s0 = inlined_call_operand.vmem [shape: f32[2,128], index: 0, kind: input, shape index: {}]   ;;  %s149_s1 = inlined_call_operand.vmem [shape: f32[8,4], index: 1, kind: input, shape index: {}]   ;;  %s150_s2 = inlined_call_operand.<no memory space> [shape: f32[1], index: 2, kind: input, shape index: {}]   ;;  %s151_s3 = inlined_call_operand.hbm [shape: f32[1,128], index: 3, kind: output, shape index: {}]  }
   0x1   :  { %v16_v0 = vld [vmem:[%s149_s1] sm:$0xff]  ;;  %75 = vset.pattern.permute.xlu0 %v108_v1  ;;  %77 = vset.pattern.permute.xlu1 %v109_v2 }
   0x2   :  { %21 = vperm.xlu0 %75, %v16_v0   ;;  %34 = vperm.xlu1 %77, %v16_v0  }
   0x3   :  { %9 = vsyncpa [#allocation4], 0  ;;  %v110_v3 = vmov 1   ;;  %v111_v4 = vmov 3   ;;  %v80_v7 = vld [vmem:[%s148_s0] ss:$0 sm:$0xff]  ;;  %v51_v22 = vstv %s150_s2 }
   0x4   :  { %v81_v8 = vld [vmem:[%s148_s0 + $0x1] ss:$0 sm:$0xff]  ;;  %s112_s19 = smov [#allocation3]   ;;  %s61_s22 = sshll.u32 %s151_s3, 4  ;;  %s62_s22 = int_to_ptr.hbm [resolvable:$true] %s61_s22 }
   0x5   :  { %s59_s20 = sshll.u32 %s112_s19, 4  ;;  %s60_s20 = int_to_ptr.vmem [resolvable:$true] %s59_s20 }
   0xa   :  { %76 = vset.pattern.permute.xlu0 %v110_v3  ;;  %78 = vset.pattern.permute.xlu1 %v111_v4 }
   0xb   :  { %27 = vperm.xlu0 %76, %v16_v0   ;;  %40 = vperm.xlu1 %78, %v16_v0  }
  0x13   :  { %79 = vset.pattern.permute.xlu0 %v111_v4 }
  0x74   :  { %v22_v5 = vpop.permute.xlu0 %21  ;;  %v35_v6 = vpop.permute.xlu1 %34 }
  0x75   :  { %v25_v10 = vmul.f32 %v80_v7, %v22_v5 }
  0x7d   :  { %v28_v9 = vpop.permute.xlu0 %27  ;;  %v41_v14 = vpop.permute.xlu1 %40 }
  0x7e   :  { %v31_v11 = vmul.f32 %v81_v8, %v28_v9 }
  0x80   :  { %v32_v12 = vadd.f32 %v31_v11, %v25_v10 }
  0x82   :  { %v37_v13 = vadd.f32 %v35_v6, %v32_v12 }
  0x84   :  { %v38_v15 = vmax.f32 %v37_v13, 0.0 }
  0x86   :  { %v43_v16 = vmul.f32 %v41_v14, %v38_v15 }
  0x88   :  { %v44_v17 = vrot.slane %v43_v16, 4 }
  0x8a   :  { %v45_v18 = vadd.f32 %v44_v17, %v43_v16 }
  0x8c   :  { %v46_v19 = vrot.slane %v45_v18, 2 }
  0x8e   :  { %v47_v20 = vadd.f32 %v46_v19, %v45_v18 }
  0x90   :  { %v48_v21 = vrot.slane %v47_v20, 1 }
  0x92   :  { %v49_v23 = vadd.f32 %v48_v21, %v47_v20 }
  0x94   :  { %v52_v24 = vadd.f32 %v51_v22, %v49_v23 }
  0x96   :  { %53 = vst [vmem:[#allocation3] sm:$0x1] %v52_v24 }
  0x97   :  { %64 = dma.vmem_to_hbm [thread:$0]  %s60_s20, 16, %s62_s22, [#allocation4]  }
  0x98   :  { %106 = dma.done.wait [#allocation4], 16  }
  0x99   :  { %107 = vsyncadd [#allocation4], 4294967280 }
  0x9a   :  { %69 = vsyncpa [#allocation4], 1 }

</bundles_post_ra>
